<compile_context>
chip_gen: v5e
topology: v5e:2x2
jax: 0.10.0
libtpu: 0.0.40
codegen_flags: <defaults>
</compile_context>

<pallas_src>
import jax
import jax.numpy as jnp
from jax.experimental import pallas as pl
from jax.experimental.pallas import tpu as pltpu

N_IN, N_HID, N_OUT = 4, 16, 3
N_OUT_PAD = 8  # minimum legal stored-output width (f32 sublane-friendly)


def mlp_kernel(x_ref, w1_ref, b1_ref, w2_ref, b2_ref, o_ref):
    # x_ref: (tb, 4)   w1_ref: (4, 16)   b1_ref: (1, 16)
    # w2_ref: (16, 8)  b2_ref: (1, 8)    o_ref:  (tb, 8)
    x = x_ref[...]

    # Layer 1 on the MXU; bias-add + ReLU on the VPU.
    h = jnp.dot(x, w1_ref[...], preferred_element_type=jnp.float32) + b1_ref[...]
    h = jnp.maximum(h, 0.0)

    # Layer 2 on the MXU; padded output lanes of w2/b2 are zero.
    y = jnp.dot(h, w2_ref[...], preferred_element_type=jnp.float32) + b2_ref[...]

    o_ref[...] = y.astype(o_ref.dtype)


def ann_forward(x, w1, b1, w2, b2, *, tile_b=2048):
    """x: (B, 4) f32, w1: (4, 16), b1: (16,), w2: (16, 3), b2: (3,) -> (B, 3)."""
    B = x.shape[0]

    # Zero-pad fc2 params to 8 output lanes; the extra lanes are sliced off.
    w2_pad = jnp.zeros((N_HID, N_OUT_PAD), jnp.float32).at[:, :N_OUT].set(w2)
    b2_pad = jnp.zeros((1, N_OUT_PAD), jnp.float32).at[:, :N_OUT].set(b2)
    b1_2d = b1.reshape(1, N_HID)

    # Batch tile: multiple of 8 (f32 sublane), capped at tile_b, and capped at
    # ~half the batch so large B always yields >= 2 grid blocks (v7x 2-TC).
    half = ((pl.cdiv(B, 2) + 7) // 8) * 8
    tb = min(tile_b, max(8, half))
    n_blocks = pl.cdiv(B, tb)  # ragged final block handled by Pallas masking

    out = pl.pallas_call(
        mlp_kernel,
        out_shape=jax.ShapeDtypeStruct((B, N_OUT_PAD), jnp.float32),
        grid=(n_blocks,),
        in_specs=[
            pl.BlockSpec((tb, N_IN), lambda i: (i, 0)),            # x: tiled on batch
            pl.BlockSpec((N_IN, N_HID), lambda i: (0, 0)),         # w1: VMEM-resident
            pl.BlockSpec((1, N_HID), lambda i: (0, 0)),            # b1: VMEM-resident
            pl.BlockSpec((N_HID, N_OUT_PAD), lambda i: (0, 0)),    # w2 (padded): resident
            pl.BlockSpec((1, N_OUT_PAD), lambda i: (0, 0)),        # b2 (padded): resident
        ],
        out_specs=pl.BlockSpec((tb, N_OUT_PAD), lambda i: (i, 0)),
        compiler_params=pltpu.CompilerParams(
            dimension_semantics=("parallel",)),                    # 2-TC shard on v7x
    )(x, w1, b1_2d, w2_pad, b2_pad)

    return out[:, :N_OUT]


def _ref(x, w1, b1, w2, b2):
    return jnp.maximum(x @ w1 + b1, 0.0) @ w2 + b2


if __name__ == "__main__":
    key = jax.random.PRNGKey(0)
    k_x, k_w1, k_b1, k_w2, k_b2 = jax.random.split(key, 5)

    # Parameters stored pre-transposed as [in, out] (torch Linear-style ranges).
    w1 = jax.random.uniform(k_w1, (N_IN, N_HID), jnp.float32, -0.5, 0.5)
    b1 = jax.random.uniform(k_b1, (N_HID,), jnp.float32, -0.5, 0.5)
    w2 = jax.random.uniform(k_w2, (N_IN * 4, N_OUT), jnp.float32, -0.25, 0.25)
    b2 = jax.random.uniform(k_b2, (N_OUT,), jnp.float32, -0.25, 0.25)

    # Small batch (single grid step).
    B = 8
    x = jax.random.normal(k_x, (B, N_IN), jnp.float32)
    out = jax.block_until_ready(ann_forward(x, w1, b1, w2, b2))
    ref = _ref(x, w1, b1, w2, b2)
    assert out.shape == (B, N_OUT)
    assert jnp.allclose(out, ref, atol=1e-5, rtol=1e-5)

    # Second check: non-multiple batch with a small tile to exercise the
    # multi-step grid + ragged-final-block (masked write) path.
    B2 = 300
    x2 = jax.random.normal(jax.random.PRNGKey(1), (B2, N_IN), jnp.float32)
    out2 = jax.block_until_ready(ann_forward(x2, w1, b1, w2, b2, tile_b=128))
    ref2 = _ref(x2, w1, b1, w2, b2)
    assert out2.shape == (B2, N_OUT)
    assert jnp.allclose(out2, ref2, atol=1e-5, rtol=1e-5)

    print("KERNEL_OK")
</pallas_src>

<mosaic_0001>
module attributes {stable_mosaic.version = 11 : i64} {
  func.func @mlp_kernel(%arg0: i32, %arg1: memref<8x4xf32, #tpu.memory_space<vmem>>, %arg2: memref<4x16xf32, #tpu.memory_space<vmem>>, %arg3: memref<1x16xf32, #tpu.memory_space<vmem>>, %arg4: memref<16x8xf32, #tpu.memory_space<vmem>>, %arg5: memref<1x8xf32, #tpu.memory_space<vmem>>, %arg6: memref<8x8xf32, #tpu.memory_space<vmem>>) attributes {dimension_semantics = [#tpu.dimension_semantics<parallel>], iteration_bounds = array<i64: 1>, scalar_prefetch = 0 : i64, scratch_operands = 0 : i64, tpu.core_type = #tpu.core_type<tc>, window_params = [{transform_indices = @transform_0, window_bounds = array<i64: 8, 4>}, {pipeline_mode = #tpu.pipeline_mode<synchronous>, transform_indices = @transform_1, window_bounds = array<i64: 4, 16>}, {pipeline_mode = #tpu.pipeline_mode<synchronous>, transform_indices = @transform_2, window_bounds = array<i64: 1, 16>}, {pipeline_mode = #tpu.pipeline_mode<synchronous>, transform_indices = @transform_3, window_bounds = array<i64: 16, 8>}, {pipeline_mode = #tpu.pipeline_mode<synchronous>, transform_indices = @transform_4, window_bounds = array<i64: 1, 8>}, {transform_indices = @transform_5, window_bounds = array<i64: 8, 8>}]} {
    %c0 = arith.constant 0 : index
    %c0_0 = arith.constant 0 : index
    %0 = vector.load %arg1[%c0, %c0_0] : memref<8x4xf32, #tpu.memory_space<vmem>>, vector<8x4xf32>
    %c0_1 = arith.constant 0 : index
    %c0_2 = arith.constant 0 : index
    %1 = vector.load %arg2[%c0_1, %c0_2] : memref<4x16xf32, #tpu.memory_space<vmem>>, vector<4x16xf32>
    %cst = arith.constant dense<0.000000e+00> : vector<8x16xf32>
    %2 = tpu.matmul %0, %1, %cst {dimension_numbers = #tpu.dot_dimension_numbers<[1], [0], [0], [1], [0, 0, 1, 1], [], []>} : vector<8x4xf32>, vector<4x16xf32>, vector<8x16xf32> -> vector<8x16xf32>
    %c0_3 = arith.constant 0 : index
    %c0_4 = arith.constant 0 : index
    %3 = vector.load %arg3[%c0_3, %c0_4] : memref<1x16xf32, #tpu.memory_space<vmem>>, vector<1x16xf32>
    %4 = vector.broadcast %3 : vector<1x16xf32> to vector<8x16xf32>
    %5 = arith.addf %2, %4 : vector<8x16xf32>
    %cst_5 = arith.constant 0.000000e+00 : f32
    %6 = vector.broadcast %cst_5 : f32 to vector<8x16xf32>
    %7 = arith.maximumf %5, %6 : vector<8x16xf32>
    %c0_6 = arith.constant 0 : index
    %c0_7 = arith.constant 0 : index
    %8 = vector.load %arg4[%c0_6, %c0_7] : memref<16x8xf32, #tpu.memory_space<vmem>>, vector<16x8xf32>
    %cst_8 = arith.constant dense<0.000000e+00> : vector<8x8xf32>
    %9 = tpu.matmul %7, %8, %cst_8 {dimension_numbers = #tpu.dot_dimension_numbers<[1], [0], [0], [1], [0, 0, 1, 1], [], []>} : vector<8x16xf32>, vector<16x8xf32>, vector<8x8xf32> -> vector<8x8xf32>
    %c0_9 = arith.constant 0 : index
    %c0_10 = arith.constant 0 : index
    %10 = vector.load %arg5[%c0_9, %c0_10] : memref<1x8xf32, #tpu.memory_space<vmem>>, vector<1x8xf32>
    %11 = vector.broadcast %10 : vector<1x8xf32> to vector<8x8xf32>
    %12 = arith.addf %9, %11 : vector<8x8xf32>
    %c0_11 = arith.constant 0 : index
    %c0_12 = arith.constant 0 : index
    %13 = vector.load %arg6[%c0_11, %c0_12] : memref<8x8xf32, #tpu.memory_space<vmem>>, vector<8x8xf32>
    tpu.vector_store %arg6[%c0_11, %c0_12], %12 {strides = array<i32>} : memref<8x8xf32, #tpu.memory_space<vmem>>, vector<8x8xf32>,
    return
  }
  func.func @transform_0(%arg0: i32) -> (i32, i32) {
    %c0_i32 = arith.constant 0 : i32
    %c0_i32_0 = arith.constant 0 : i32
    return %arg0, %c0_i32 : i32, i32
  }
  func.func @transform_1(%arg0: i32) -> (i32, i32) {
    %c0_i32 = arith.constant 0 : i32
    %c0_i32_0 = arith.constant 0 : i32
    %c0_i32_1 = arith.constant 0 : i32
    return %c0_i32, %c0_i32_0 : i32, i32
  }
  func.func @transform_2(%arg0: i32) -> (i32, i32) {
    %c0_i32 = arith.constant 0 : i32
    %c0_i32_0 = arith.constant 0 : i32
    %c0_i32_1 = arith.constant 0 : i32
    return %c0_i32, %c0_i32_0 : i32, i32
  }
  func.func @transform_3(%arg0: i32) -> (i32, i32) {
    %c0_i32 = arith.constant 0 : i32
    %c0_i32_0 = arith.constant 0 : i32
    %c0_i32_1 = arith.constant 0 : i32
    return %c0_i32, %c0_i32_0 : i32, i32
  }
  func.func @transform_4(%arg0: i32) -> (i32, i32) {
    %c0_i32 = arith.constant 0 : i32
    %c0_i32_0 = arith.constant 0 : i32
    %c0_i32_1 = arith.constant 0 : i32
    return %c0_i32, %c0_i32_0 : i32, i32
  }
  func.func @transform_5(%arg0: i32) -> (i32, i32) {
    %c0_i32 = arith.constant 0 : i32
    %c0_i32_0 = arith.constant 0 : i32
    return %arg0, %c0_i32 : i32, i32
  }
}

</mosaic_0001>

<bundles_post_ra>
// kernel: tpu_custom_call.1
= control target key start
LH: loop header
LB: loop body
LE: loop exit
PB: predicated region body
PF: predicated region fallthrough
CT: control target
= control target key end

     0   :  { %vm31_vm0 = vcmask 1043456   ;;  %vm27_vm1 = vcmask 31744   ;;  %s188_s0 = inlined_call_operand.vmem [shape: f32[8,4], index: 0, kind: input, shape index: {}]   ;;  %s189_s1 = inlined_call_operand.vmem [shape: f32[4,16], index: 1, kind: input, shape index: {}]   ;;  %s190_s2 = inlined_call_operand.vmem [shape: f32[1,16], index: 2, kind: input, shape index: {}]   ;;  %s191_s3 = inlined_call_operand.vmem [shape: f32[16,8], index: 3, kind: input, shape index: {}]   ;;  %s192_s4 = inlined_call_operand.vmem [shape: f32[1,8], index: 4, kind: input, shape index: {}]   ;;  %s193_s5 = inlined_call_operand.hbm [shape: f32[8,8], index: 5, kind: output, shape index: {}]  }
   0x1   :  { %v22_v0 = vld [vmem:[%s189_s1] sm:$0xf] }
   0x2   :  { %v21_v1 = vld [vmem:[%s188_s0] sm:$0xff]  ;;  %104 = vmatpush.msk.msra.mxu0 %vm31_vm0, %v22_v0 }
   0x3   :  { %105 = vmatmul.msk.f32.vlgmr.msra.gmra.mxu0 %vm27_vm1, %v21_v1 }
   0x4   :  { %10 = vsyncpa [#allocation3], 0  ;;  %v57_v2 = vld [vmem:[%s191_s3 + $0x8] sm:$0xff]  ;;  %v56_v3 = vld [vmem:[%s191_s3] sm:$0xff]  ;;  %vm62_vm2 = vcmask 130048   ;;  %s136_s28 = smov [#allocation2]  }
   0x5   :  { %80 = vmatpush.msra.mxu1 %v57_v2  ;;  %v108_v4 = vld [vmem:[%s190_s2] ss:$0 sm:$0xff]  ;;  %s93_s29 = sshll.u32 %s136_s28, 4  ;;  %s95_s3 = sshll.u32 %s193_s5, 4  ;;  %vm86_vm3 = vcmask 64512   ;;  %s94_s29 = int_to_ptr.vmem [resolvable:$true] %s93_s29  ;;  %s96_s3 = int_to_ptr.hbm [resolvable:$true] %s95_s3 }
   0x6   :  { %v109_v8 = vld [vmem:[%s192_s4] ss:$0 sm:$0xff] }
   0x7   :  { %81 = vmatpush.msra.mxu1 %v56_v3 }
  0x80   :  { %v52_v5 = vpop.f32.mrf.mxu0 }
  0x81   :  { %v53_v6 = vadd.f32 %v108_v4, %v52_v5 }
  0x83   :  { %v55_v7 = vmax.f32 %v53_v6, 0.0 }
  0x85   :  { %106 = vmatmul.msk.f32.vlgmr.msra.gmra.mxu1 %vm62_vm2, %v55_v7 }
 0x102   :  { %v83_v9 = vpop.f32.mrf.mxu1 }
 0x103   :  { %v84_v10 = vadd.f32 %v109_v8, %v83_v9 }
 0x105   :  { %87 = vst.msk [vmem:[#allocation2] sm:$0xff] %vm86_vm3, %v84_v10 }
 0x106   :  { %98 = dma.vmem_to_hbm [thread:$0]  %s94_s29, 128, %s96_s3, [#allocation3]  }
 0x107   :  { %134 = dma.done.wait [#allocation3], 128  }
 0x108   :  { %135 = vsyncadd [#allocation3], 4294967168 }
 0x109   :  { %103 = vsyncpa [#allocation3], 1 }

</bundles_post_ra>
